<compile_context>
chip_gen: v7x
topology: tpu7x:2x2x1
jax: 0.10.0
libtpu: 0.0.40
codegen_flags: <defaults>
</compile_context>

<pallas_src>
import jax
import jax.numpy as jnp
from jax.experimental import pallas as pl
from jax.experimental.pallas import tpu as pltpu


def _dkl_kernel(alphas_ref, mu_ref, logvar_ref, out_ref):
    a = alphas_ref[...]                      # (TB, K, D)  -- D on the 128-lane axis
    mu = mu_ref[...][:, None, :]             # (TB, 1, D)  -> broadcasts over K (sublanes)
    lv = logvar_ref[...][:, None, :]         # (TB, 1, D)

    mu_star = a * mu                         # (TB, K, D)
    lv_star = a * lv                         # (TB, K, D)

    d = jnp.float32(a.shape[-1])
    # sum_D(1 + lv* - mu*^2 - exp(lv*)) = D + sum_D(lv* - mu*^2 - exp(lv*))
    red = jnp.sum(lv_star - mu_star * mu_star - jnp.exp(lv_star), axis=-1)  # (TB, K)
    kl = -0.5 * (d + red)
    out_ref[...] = kl.astype(out_ref.dtype)


def _pick_batch_tile(B, D, K, target_bytes=4 << 20):
    """Batch tile so the streamed alphas tile is a few MiB (HBM-bound kernel)."""
    row_bytes = D * K * 4
    tb = max(1, target_bytes // row_bytes)
    if tb >= B:
        return B                               # whole batch in one step
    # keep at least 2 grid steps so v7x's two TensorCores both get work
    tb = min(tb, max(1, B // 2))
    if tb >= 8:
        tb = (tb // 8) * 8                     # sublane-friendly second-minor dim
    else:
        tb = B if B <= 8 else 8
    return int(min(tb, B))


def dkl_loss(z_stars, alphas, gaussian_units):
    """Pallas implementation of DKLLoss.forward.

    z_stars: unused (matches the PyTorch forward).
    alphas: (B, D, K) float32
    gaussian_units: tuple/list (mu, log_var), each (B, D) float32
    returns: kl of shape (B, K) float32
    """
    del z_stars  # unused by the reference forward
    mu, log_var = gaussian_units[0], gaussian_units[1]
    B, D, K = alphas.shape
    assert mu.shape == (B, D) and log_var.shape == (B, D)

    # Layout plumbing: put the large D axis on lanes; keep mu/log_var dense 2-D.
    alphas_t = jnp.transpose(alphas, (0, 2, 1)).astype(jnp.float32)   # (B, K, D)
    mu = mu.astype(jnp.float32)
    log_var = log_var.astype(jnp.float32)

    tb = _pick_batch_tile(B, D, K)
    grid = (pl.cdiv(B, tb),)

    # Double-buffered tiles: alphas + mu + log_var + out, plus headroom.
    per_step = 2 * (tb * K * D * 4 + 2 * tb * D * 4 + tb * K * 4)
    vmem_limit = int(min(max(per_step + (4 << 20), 16 << 20), 48 << 20))

    out = pl.pallas_call(
        _dkl_kernel,
        out_shape=jax.ShapeDtypeStruct((B, K), jnp.float32),
        grid_spec=pltpu.PrefetchScalarGridSpec(
            num_scalar_prefetch=0,
            grid=grid,
            in_specs=[
                pl.BlockSpec((tb, K, D), lambda b: (b, 0, 0)),   # alphas (B,K,D)
                pl.BlockSpec((tb, D), lambda b: (b, 0)),         # mu (B,D)
                pl.BlockSpec((tb, D), lambda b: (b, 0)),         # log_var (B,D)
            ],
            out_specs=pl.BlockSpec((tb, K), lambda b: (b, 0)),
        ),
        compiler_params=pltpu.CompilerParams(
            dimension_semantics=("parallel",),
            vmem_limit_bytes=vmem_limit,
        ),
    )(alphas_t, mu, log_var)
    return out


def _reference(alphas, mu, log_var):
    mu_star = alphas * mu[..., None]
    lv_star = alphas * log_var[..., None]
    return -0.5 * jnp.sum(1.0 + lv_star - mu_star**2 - jnp.exp(lv_star), axis=1)


if __name__ == "__main__":
    key = jax.random.PRNGKey(0)
    k1, k2, k3, k4 = jax.random.split(key, 4)

    B, D, K = 8, 128, 8     # batch, latent dim, number of mixture components
    mu = jax.random.normal(k1, (B, D), dtype=jnp.float32)
    log_var = 0.1 * jax.random.normal(k2, (B, D), dtype=jnp.float32)
    alphas = jax.nn.softmax(jax.random.normal(k3, (B, D, K), dtype=jnp.float32), axis=-1)
    z_stars = jax.random.normal(k4, (B, D, K), dtype=jnp.float32)  # unused, mirrors API

    kl = dkl_loss(z_stars, alphas, (mu, log_var))
    kl = jax.block_until_ready(kl)

    ref = _reference(alphas, mu, log_var)
    assert kl.shape == (B, K)
    assert jnp.allclose(kl, ref, atol=1e-5, rtol=1e-5), (kl, ref)

    print("KERNEL_OK")
</pallas_src>

<mosaic_0001>
module attributes {stable_mosaic.version = 11 : i64} {
  func.func @_dkl_kernel(%arg0: i32, %arg1: memref<8x8x128xf32, #tpu.memory_space<vmem>>, %arg2: memref<8x128xf32, #tpu.memory_space<vmem>>, %arg3: memref<8x128xf32, #tpu.memory_space<vmem>>, %arg4: memref<8x8xf32, #tpu.memory_space<vmem>>) attributes {dimension_semantics = [#tpu.dimension_semantics<parallel>], iteration_bounds = array<i64: 1>, scalar_prefetch = 0 : i64, scratch_operands = 0 : i64, tpu.core_type = #tpu.core_type<tc>, window_params = [{transform_indices = @transform_0, window_bounds = array<i64: 8, 8, 128>}, {transform_indices = @transform_1, window_bounds = array<i64: 8, 128>}, {transform_indices = @transform_2, window_bounds = array<i64: 8, 128>}, {transform_indices = @transform_3, window_bounds = array<i64: 8, 8>}]} {
    %c0 = arith.constant 0 : index
    %c0_0 = arith.constant 0 : index
    %c0_1 = arith.constant 0 : index
    %0 = vector.load %arg1[%c0, %c0_0, %c0_1] : memref<8x8x128xf32, #tpu.memory_space<vmem>>, vector<8x8x128xf32>
    %c0_2 = arith.constant 0 : index
    %c0_3 = arith.constant 0 : index
    %1 = vector.load %arg2[%c0_2, %c0_3] : memref<8x128xf32, #tpu.memory_space<vmem>>, vector<8x128xf32>
    %2 = vector.shape_cast %1 : vector<8x128xf32> to vector<8x1x128xf32>
    %c0_4 = arith.constant 0 : index
    %c0_5 = arith.constant 0 : index
    %3 = vector.load %arg3[%c0_4, %c0_5] : memref<8x128xf32, #tpu.memory_space<vmem>>, vector<8x128xf32>
    %4 = vector.shape_cast %3 : vector<8x128xf32> to vector<8x1x128xf32>
    %5 = vector.broadcast %2 : vector<8x1x128xf32> to vector<8x8x128xf32>
    %6 = arith.mulf %0, %5 : vector<8x8x128xf32>
    %7 = vector.broadcast %4 : vector<8x1x128xf32> to vector<8x8x128xf32>
    %8 = arith.mulf %0, %7 : vector<8x8x128xf32>
    %9 = arith.mulf %6, %6 : vector<8x8x128xf32>
    %10 = arith.subf %8, %9 : vector<8x8x128xf32>
    %11 = math.exp %8 : vector<8x8x128xf32>
    %12 = arith.subf %10, %11 : vector<8x8x128xf32>
    %cst = arith.constant dense<0.000000e+00> : vector<8x8xf32>
    %13 = vector.multi_reduction <add>, %12, %cst [2] : vector<8x8x128xf32> to vector<8x8xf32>
    %cst_6 = arith.constant 1.280000e+02 : f32
    %14 = vector.broadcast %cst_6 : f32 to vector<8x8xf32>
    %15 = arith.addf %14, %13 : vector<8x8xf32>
    %cst_7 = arith.constant -5.000000e-01 : f32
    %16 = vector.broadcast %cst_7 : f32 to vector<8x8xf32>
    %17 = arith.mulf %16, %15 : vector<8x8xf32>
    %c0_8 = arith.constant 0 : index
    %c0_9 = arith.constant 0 : index
    %18 = vector.load %arg4[%c0_8, %c0_9] : memref<8x8xf32, #tpu.memory_space<vmem>>, vector<8x8xf32>
    tpu.vector_store %arg4[%c0_8, %c0_9], %17 {strides = array<i32>} : memref<8x8xf32, #tpu.memory_space<vmem>>, vector<8x8xf32>,
    return
  }
  func.func @transform_0(%arg0: i32) -> (i32, i32, i32) {
    %c0_i32 = arith.constant 0 : i32
    %c0_i32_0 = arith.constant 0 : i32
    %c0_i32_1 = arith.constant 0 : i32
    return %arg0, %c0_i32, %c0_i32_0 : i32, i32, i32
  }
  func.func @transform_1(%arg0: i32) -> (i32, i32) {
    %c0_i32 = arith.constant 0 : i32
    %c0_i32_0 = arith.constant 0 : i32
    return %arg0, %c0_i32 : i32, i32
  }
  func.func @transform_2(%arg0: i32) -> (i32, i32) {
    %c0_i32 = arith.constant 0 : i32
    %c0_i32_0 = arith.constant 0 : i32
    return %arg0, %c0_i32 : i32, i32
  }
  func.func @transform_3(%arg0: i32) -> (i32, i32) {
    %c0_i32 = arith.constant 0 : i32
    %c0_i32_0 = arith.constant 0 : i32
    return %arg0, %c0_i32 : i32, i32
  }
}

</mosaic_0001>

<bundles_post_ra>
// kernel: tpu_custom_call.1
= control target key start
LH: loop header
LB: loop body
LE: loop exit
PB: predicated region body
PF: predicated region fallthrough
CT: control target
= control target key end

     0   :  { %8 = vsyncpa [#allocation3], 0  ;;  %s648_s0 = inlined_call_operand.hbm [shape: f32[8,8,128], index: 0, kind: input, shape index: {}]   ;;  %s649_s1 = inlined_call_operand.hbm [shape: f32[8,128], index: 1, kind: input, shape index: {}]   ;;  %s650_s2 = inlined_call_operand.hbm [shape: f32[8,128], index: 2, kind: input, shape index: {}]   ;;  %s651_s3 = inlined_call_operand.hbm [shape: f32[8,8], index: 3, kind: output, shape index: {}]  }
   0x1   :  { %9 = vsyncpa [#allocation6], 0 }
   0x2   :  { %10 = vsyncpa [#allocation4], 0  ;;  %s524_s12 = smov [#allocation5]   ;;  %s525_s14 = smov [#allocation2]  }
   0x3   :  { %s29_s13 = sshll.u32 %s524_s12, 4  ;;  %s16_s15 = sshll.u32 %s525_s14, 4  ;;  %s30_s13 = int_to_ptr.vmem [resolvable:$true] %s29_s13  ;;  %s551_s15 = int_to_ptr.vmem [resolvable:$true] %s16_s15 }
   0x4   :  { %s430_s18 = scalar_lea.hbm %s649_s1, 128 }
   0x5   :  { %p431_p0 = scmp.ne.s32.totalorder %s649_s1, %s430_s18  ;;  %p434_p1 = scmp.lt.u32.totalorder %s430_s18, %s649_s1 }
   0x7   :  { %p436_p2 = pnand %p434_p1, %p431_p0 }
   0x9   :  { %439 = shalt.err (!%p436_p2)
}
   0xa   :  { %s440_s23 = scalar_lea.vmem %s30_s13, 128  ;;  %p445_p4 = scmp.lt.s32.totalorder %s30_s13, %s30_s13 }
   0xb   :  { %p441_p3 = scmp.ne.s32.totalorder %s30_s13, %s440_s23  ;;  %p446_p5 = scmp.lt.s32.totalorder %s440_s23, %s440_s23 }
   0xd   :  { %p447_p6 = por %p446_p5, %p445_p4 }
   0xf   :  { %p448_p7 = pnand %p447_p6, %p441_p3 }
  0x11   :  { %451 = shalt.err (!%p448_p7)
}
  0x12   :  { %32 = dma.hbm_to_vmem [thread:$0]  %s649_s1, 128, %s30_s13, [#allocation6]  }
  0x13   :  { %s452_s28 = scalar_lea.hbm %s648_s0, 1024 }
  0x14   :  { %p453_p8 = scmp.ne.s32.totalorder %s648_s0, %s452_s28  ;;  %p456_p9 = scmp.lt.u32.totalorder %s452_s28, %s648_s0 }
  0x16   :  { %p458_p10 = pnand %p456_p9, %p453_p8 }
  0x18   :  { %461 = shalt.err (!%p458_p10)
}
  0x19   :  { %s462_s6 = scalar_lea.vmem %s551_s15, 1024  ;;  %p467_p12 = scmp.lt.s32.totalorder %s551_s15, %s551_s15 }
  0x1a   :  { %p463_p11 = scmp.ne.s32.totalorder %s551_s15, %s462_s6  ;;  %p468_p13 = scmp.lt.s32.totalorder %s462_s6, %s462_s6 }
  0x1c   :  { %p469_p0 = por %p468_p13, %p467_p12 }
  0x1e   :  { %p470_p1 = pnand %p469_p0, %p463_p11 }
  0x20   :  { %473 = shalt.err (!%p470_p1)
}
  0x21   :  { %s526_s1 = smov 128   ;;  %s527_s7 = smov 8  }
  0x22   :  { %22 = dma.hbm_to_vmem [thread:$0]  %s648_s0, 1024, %s551_s15, [#allocation3], %s526_s1, %s526_s1, %s527_s7  }
  0x23   :  { %s528_s10 = smov [#allocation7]   ;;  %s474_s14 = scalar_lea.hbm %s650_s2, 128 }
  0x24   :  { %s39_s11 = sshll.u32 %s528_s10, 4  ;;  %p475_p2 = scmp.ne.s32.totalorder %s650_s2, %s474_s14  ;;  %s40_s11 = int_to_ptr.vmem [resolvable:$true] %s39_s11 }
  0x25   :  { %p478_p3 = scmp.lt.u32.totalorder %s474_s14, %s650_s2 }
  0x27   :  { %p480_p4 = pnand %p478_p3, %p475_p2 }
  0x29   :  { %483 = shalt.err (!%p480_p4)
}
  0x2a   :  { %s484_s20 = scalar_lea.vmem %s40_s11, 128  ;;  %p489_p6 = scmp.lt.s32.totalorder %s40_s11, %s40_s11 }
  0x2b   :  { %p485_p5 = scmp.ne.s32.totalorder %s40_s11, %s484_s20  ;;  %p490_p7 = scmp.lt.s32.totalorder %s484_s20, %s484_s20 }
  0x2d   :  { %p491_p8 = por %p490_p7, %p489_p6 }
  0x2f   :  { %p492_p9 = pnand %p491_p8, %p485_p5 }
  0x31   :  { %495 = shalt.err (!%p492_p9)
}
  0x32   :  { %42 = dma.hbm_to_vmem [thread:$0]  %s650_s2, 128, %s40_s11, [#allocation6]  }
  0x33   :  { %518 = dma.done.wait [#allocation3], 1024  }
  0x34   :  { %519 = vsyncadd [#allocation3], 4294966272 }
  0x35   :  { %520 = dma.done.wait [#allocation6], 256  }
  0x36   :  { %521 = vsyncadd [#allocation6], 4294967040  ;;  %v66_v0 = vlaneseq  ;;  %v529_v1 = vmov 1966171168   ;;  %v60_v8 = vld [vmem:[#allocation5] sm:$0xff]  ;;  %v111_v9 = vld [vmem:[#allocation7] sm:$0xff] }
  0x37   :  { %v64_v2 = vunpack.c.l.s4 %v529_v1  ;;  %v113_v11 = vcombine.high %v111_v9, %v111_v9  ;;  %v62_v14 = vcombine.high %v60_v8, %v60_v8  ;;  %v52_v19 = vld [vmem:[#allocation2] sm:$0xff]  ;;  %v54_v25 = vld [vmem:[#allocation2 + $0x10] sm:$0xff]  ;;  %v53_v32 = vld [vmem:[#allocation2 + $0x8] sm:$0xff]  ;;  %vm372_vm0 = vcmask 1041409   ;;  %s530_s2 = smov [#allocation8]  }
  0x38   :  { %v67_v3 = vshrl.u32 %v66_v0, 7  ;;  %v339_v4 = vand.u32 127, %v66_v0  ;;  %v55_v41 = vld [vmem:[#allocation2 + $0x18] sm:$0xff]  ;;  %v56_v50 = vld [vmem:[#allocation2 + $0x20] sm:$0xff]  ;;  %vm374_vm1 = vcmask 1042434   ;;  %vm376_vm2 = vcmask 1043459  }
  0x39   :  { %v65_v5 = vunpack.c.0.s8 %v64_v2  ;;  %vm378_vm3 = vcmask 1044484   ;;  %vm380_vm4 = vcmask 1045509   ;;  %vm382_vm5 = vcmask 1046534   ;;  %s395_s21 = sshll.u32 %s530_s2, 4  ;;  %s396_s21 = int_to_ptr.vmem [resolvable:$true] %s395_s21 }
  0x3a   :  { %v594_v6 = vsub.s32 %v339_v4, %v67_v3  ;;  %v600_v13 = vsub.s32 0, %v67_v3  ;;  %vm384_vm6 = vcmask 1047559   ;;  %vm387_vm7 = vcmask 64512   ;;  %s496_s22 = scalar_lea.vmem %s396_s21, 128  ;;  %p501_p11 = scmp.lt.s32.totalorder %s396_s21, %s396_s21 }
  0x3b   :  { %v596_v7 = vsub.s32 %v65_v5, %v67_v3  ;;  %v58_v3 = vld [vmem:[#allocation2 + $0x30] sm:$0xff]  ;;  %p497_p10 = scmp.ne.s32.totalorder %s396_s21, %s496_s22  ;;  %p502_p12 = scmp.lt.s32.totalorder %s496_s22, %s496_s22 }
  0x3d   :  { %v69_v10 = vrot.slane %v60_v8, %v596_v7  ;;  %v120_v12 = vrot.slane %v111_v9, %v596_v7  ;;  %v127_v20 = vrot.slane %v113_v11, %v596_v7  ;;  %v76_v28 = vrot.slane %v62_v14, %v596_v7  ;;  %v57_v9 = vld [vmem:[#allocation2 + $0x28] sm:$0xff]  ;;  %p503_p13 = por %p502_p12, %p501_p11 }
  0x3f   :  { %v85_v15 = vrot.slane %v69_v10, %v596_v7  ;;  %v136_v16 = vrot.slane %v120_v12, %v596_v7  ;;  %v77_v17 = vcombine.high %v69_v10, %v69_v10  ;;  %v128_v18 = vcombine.high %v120_v12, %v120_v12  ;;  %p504_p0 = pnand %p503_p13, %p497_p10 }
  0x40   :  { %v143_v36 = vrot.slane %v127_v20, %v596_v7  ;;  %v92_v45 = vrot.slane %v76_v28, %v596_v7  ;;  %v78_v59 = vcombine.high %v76_v28, %v76_v28  ;;  %v129_v60 = vcombine.high %v127_v20, %v127_v20 }
  0x41   :  { %v165_v21 = vrot.slane %v85_v15, %v600_v13  ;;  %v213_v22 = vrot.slane %v136_v16, %v600_v13  ;;  %v107_v23 = vcombine.high %v85_v15, %v85_v15  ;;  %v158_v24 = vcombine.high %v136_v16, %v136_v16 }
  0x42   :  { %v99_v26 = vrot.slane %v77_v17, %v596_v7  ;;  %v150_v27 = vrot.slane %v128_v18, %v596_v7  ;;  %v229_v53 = vrot.slane %v143_v36, %v600_v13  ;;  %v181_v56 = vrot.slane %v92_v45, %v600_v13 }
  0x43   :  { %v250_v29 = vmul.f32 %v213_v22, %v52_v19  ;;  %v173_v30 = vrot.slane %v107_v23, %v600_v13  ;;  %v221_v31 = vrot.slane %v158_v24, %v600_v13  ;;  %v202_v37 = vmul.f32 %v165_v21, %v52_v19  ;;  %v59_v24 = vld [vmem:[#allocation2 + $0x38] sm:$0xff] }
  0x44   :  { %v217_v33 = vrot.slane %v150_v27, %v600_v13  ;;  %v109_v34 = vcombine.high %v99_v26, %v99_v26  ;;  %v160_v35 = vcombine.high %v150_v27, %v150_v27  ;;  %v169_v40 = vrot.slane %v99_v26, %v600_v13 }
  0x45   :  { %v274_v38 = vmul.f32 1.442695, %v250_v29  ;;  %v252_v39 = vmul.f32 %v221_v31, %v54_v25  ;;  %v204_v42 = vmul.f32 %v173_v30, %v54_v25  ;;  %v258_v51 = vmul.f32 %v202_v37, %v202_v37 }
  0x46   :  { %v251_v43 = vmul.f32 %v217_v33, %v53_v32  ;;  %v225_v44 = vrot.slane %v160_v35, %v600_v13  ;;  %v177_v47 = vrot.slane %v109_v34, %v600_v13  ;;  %v203_v52 = vmul.f32 %v169_v40, %v53_v32 }
  0x47   :  { %414 = vpow2.f32 %v274_v38  ;;  %v278_v46 = vmul.f32 1.442695, %v252_v39  ;;  %v260_v54 = vmul.f32 %v204_v42, %v204_v42  ;;  %v254_v58 = vmul.f32 %v229_v53, %v56_v50 }
  0x48   :  { %v276_v48 = vmul.f32 1.442695, %v251_v43  ;;  %v253_v49 = vmul.f32 %v225_v44, %v55_v41  ;;  %v205_v57 = vmul.f32 %v177_v47, %v55_v41  ;;  %v108_v61 = vcombine.high %v92_v45, %v92_v45 }
  0x49   :  { %416 = vpow2.f32 %v278_v46  ;;  %v159_v62 = vcombine.high %v143_v36, %v143_v36  ;;  %v259_v63 = vmul.f32 %v203_v52, %v203_v52  ;;  %v282_v0 = vmul.f32 1.442695, %v254_v58 }
  0x4a   :  { %418 = vpow2.f32 %v276_v48  ;;  %v280_v55 = vmul.f32 1.442695, %v253_v49  ;;  %v106_v1 = vrot.slane %v78_v59, %v596_v7  ;;  %v157_v2 = vrot.slane %v129_v60, %v596_v7 }
  0x4b   :  { %v266_v4 = vsub.f32 %v250_v29, %v258_v51  ;;  %v268_v5 = vsub.f32 %v252_v39, %v260_v54  ;;  %v206_v8 = vmul.f32 %v181_v56, %v56_v50  ;;  %v237_v10 = vrot.slane %v159_v62, %v600_v13 }
  0x4c   :  { %420 = vpow2.f32 %v280_v55  ;;  %v261_v11 = vmul.f32 %v205_v57, %v205_v57  ;;  %v233_v12 = vrot.slane %v157_v2, %v600_v13  ;;  %v189_v14 = vrot.slane %v108_v61, %v600_v13 }
  0x4d   :  { %422 = vpow2.f32 %v282_v0  ;;  %v185_v15 = vrot.slane %v106_v1, %v600_v13  ;;  %v256_v16 = vmul.f32 %v237_v10, %v58_v3  ;;  %v110_v17 = vcombine.high %v106_v1, %v106_v1 }
  0x4e   :  { %v161_v18 = vcombine.high %v157_v2, %v157_v2  ;;  %v267_v7 = vsub.f32 %v251_v43, %v259_v63  ;;  %v255_v20 = vmul.f32 %v233_v12, %v57_v9  ;;  %v262_v22 = vmul.f32 %v206_v8, %v206_v8 }
  0x4f   :  { %v286_v23 = vmul.f32 1.442695, %v256_v16  ;;  %v269_v26 = vsub.f32 %v253_v49, %v261_v11  ;;  %v208_v28 = vmul.f32 %v189_v14, %v58_v3  ;;  %v207_v32 = vmul.f32 %v185_v15, %v57_v9 }
  0x50   :  { %v284_v27 = vmul.f32 1.442695, %v255_v20  ;;  %v241_v29 = vrot.slane %v161_v18, %v600_v13  ;;  %v193_v33 = vrot.slane %v110_v17, %v600_v13  ;;  %v270_v37 = vsub.f32 %v254_v58, %v262_v22 }
  0x51   :  { %v415_v19 = vpop.eup %414  ;;  %424 = vpow2.f32 %v286_v23  ;;  %v264_v39 = vmul.f32 %v208_v28, %v208_v28  ;;  %v263_v41 = vmul.f32 %v207_v32, %v207_v32 }
  0x52   :  { %v290_v21 = vsub.f32 %v266_v4, %v415_v19  ;;  %426 = vpow2.f32 %v284_v27  ;;  %v257_v35 = vmul.f32 %v241_v29, %v59_v24  ;;  %v209_v42 = vmul.f32 %v193_v33, %v59_v24 }
  0x53   :  { %v417_v25 = vpop.eup %416  ;;  %v272_v45 = vsub.f32 %v256_v16, %v264_v39  ;;  %v271_v46 = vsub.f32 %v255_v20, %v263_v41 }
  0x54   :  { %v419_v30 = vpop.eup %418  ;;  %298 = vadd.xlane.f32.xlu0 %v290_v21  ;;  %v292_v31 = vsub.f32 %v268_v5, %v417_v25  ;;  %v288_v40 = vmul.f32 1.442695, %v257_v35  ;;  %v265_v13 = vmul.f32 %v209_v42, %v209_v42 }
  0x55   :  { %v291_v34 = vsub.f32 %v267_v7, %v419_v30 }
  0x56   :  { %v421_v36 = vpop.eup %420  ;;  %302 = vadd.xlane.f32.xlu1 %v292_v31  ;;  %428 = vpow2.f32 %v288_v40  ;;  %v273_v51 = vsub.f32 %v257_v35, %v265_v13 }
  0x57   :  { %v293_v38 = vsub.f32 %v269_v26, %v421_v36  ;;  %v423_v43 = vpop.eup %422 }
  0x58   :  { %300 = vadd.xlane.f32.xlu0 %v291_v34  ;;  %v294_v44 = vsub.f32 %v270_v37, %v423_v43 }
  0x5a   :  { %304 = vadd.xlane.f32.xlu1 %v293_v38 }
  0x5b   :  { %v425_v47 = vpop.eup %424 }
  0x5c   :  { %306 = vadd.xlane.f32.xlu0 %v294_v44  ;;  %v427_v48 = vpop.eup %426  ;;  %v296_v49 = vsub.f32 %v272_v45, %v425_v47 }
  0x5d   :  { %v295_v50 = vsub.f32 %v271_v46, %v427_v48 }
  0x5f   :  { %308 = vadd.xlane.f32.xlu1 %v295_v50 }
  0x60   :  { %310 = vadd.xlane.f32.xlu0 %v296_v49  ;;  %v429_v52 = vpop.eup %428 }
  0x61   :  { %v297_v53 = vsub.f32 %v273_v51, %v429_v52 }
  0x63   :  { %312 = vadd.xlane.f32.xlu1 %v297_v53 }
  0xe1   :  { %v299_v54 = vpop.xlane.xlu0 %298 }
  0xe2   :  { %v314_v55 = vadd.f32 128.0, %v299_v54 }
  0xe3   :  { %v303_v56 = vpop.xlane.xlu1 %302 }
  0xe4   :  { %v316_v57 = vadd.f32 128.0, %v303_v56  ;;  %v322_v59 = vmul.f32 -0.5, %v314_v55 }
  0xe5   :  { %v301_v58 = vpop.xlane.xlu0 %300 }
  0xe6   :  { %v315_v60 = vadd.f32 128.0, %v301_v58  ;;  %v324_v61 = vmul.f32 -0.5, %v316_v57  ;;  %v343_v2 = vrot.slane %v322_v59, %v594_v6 }
  0xe7   :  { %v305_v62 = vpop.xlane.xlu1 %304 }
  0xe8   :  { %v323_v63 = vmul.f32 -0.5, %v315_v60  ;;  %v317_v0 = vadd.f32 128.0, %v305_v62  ;;  %v351_v8 = vrot.slane %v324_v61, %v594_v6 }
  0xe9   :  { %v307_v1 = vpop.xlane.xlu0 %306 }
  0xea   :  { %v347_v3 = vrot.slane %v323_v63, %v594_v6  ;;  %v325_v4 = vmul.f32 -0.5, %v317_v0  ;;  %v318_v5 = vadd.f32 128.0, %v307_v1 }
  0xec   :  { %v373_v9 = vsel %vm372_vm0, %v347_v3, %v343_v2  ;;  %v355_v10 = vrot.slane %v325_v4, %v594_v6  ;;  %v326_v11 = vmul.f32 -0.5, %v318_v5  ;;  %v309_v16 = vpop.xlane.xlu1 %308 }
  0xed   :  { %v375_v12 = vsel %vm374_vm1, %v351_v8, %v373_v9  ;;  %v311_v14 = vpop.xlane.xlu0 %310  ;;  %v319_v19 = vadd.f32 128.0, %v309_v16 }
  0xee   :  { %v359_v15 = vrot.slane %v326_v11, %v594_v6  ;;  %v320_v17 = vadd.f32 128.0, %v311_v14  ;;  %v377_v18 = vsel %vm376_vm2, %v355_v10, %v375_v12 }
  0xef   :  { %v327_v20 = vmul.f32 -0.5, %v319_v19 }
  0xf0   :  { %v328_v7 = vmul.f32 -0.5, %v320_v17  ;;  %v379_v21 = vsel %vm378_vm3, %v359_v15, %v377_v18  ;;  %v313_v23 = vpop.xlane.xlu1 %312 }
  0xf1   :  { %v363_v24 = vrot.slane %v327_v20, %v594_v6  ;;  %v321_v25 = vadd.f32 128.0, %v313_v23 }
  0xf2   :  { %v367_v22 = vrot.slane %v328_v7, %v594_v6 }
  0xf3   :  { %v381_v26 = vsel %vm380_vm4, %v363_v24, %v379_v21  ;;  %v329_v27 = vmul.f32 -0.5, %v321_v25 }
  0xf4   :  { %v383_v28 = vsel %vm382_vm5, %v367_v22, %v381_v26 }
  0xf5   :  { %v371_v29 = vrot.slane %v329_v27, %v594_v6 }
  0xf7   :  { %v385_v30 = vsel %vm384_vm6, %v371_v29, %v383_v28 }
  0xf8   :  { %388 = vst.msk [vmem:[#allocation8] sm:$0xff] %vm387_vm7, %v385_v30 }
  0xf9   :  { %507 = shalt.err (!%p504_p0)
}
  0xfa   :  { %s508_s25 = scalar_lea.hbm %s651_s3, 128 }
  0xfb   :  { %p509_p1 = scmp.ne.s32.totalorder %s651_s3, %s508_s25  ;;  %p512_p2 = scmp.lt.u32.totalorder %s508_s25, %s651_s3 }
  0xfd   :  { %p514_p3 = pnand %p512_p2, %p509_p1 }
  0xff   :  { %517 = shalt.err (!%p514_p3)
}
 0x100   :  { %398 = dma.vmem_to_hbm [thread:$0]  %s396_s21, 128, %s651_s3, [#allocation4]  }
 0x101   :  { %522 = dma.done.wait [#allocation4], 128  }
 0x102   :  { %523 = vsyncadd [#allocation4], 4294967168 }
 0x103   :  { %402 = vsyncpa [#allocation3], 1 }
 0x104   :  { %403 = vsyncpa [#allocation6], 1 }
 0x105   :  { %404 = vsyncpa [#allocation4], 1 }

</bundles_post_ra>
